<compile_context>
chip_gen: v6e
topology: v6e:2x2x1
jax: 0.10.0
libtpu: 0.0.40
codegen_flags: <defaults>
</compile_context>

<pallas_src>
import numpy as np
import jax
import jax.numpy as jnp
from jax import lax
from jax.experimental import pallas as pl
from jax.experimental.pallas import tpu as pltpu

EPS = 1e-5
LANE = 128                       # lane-dense channel padding


def _round_up(x, m):
    return (x + m - 1) // m * m


def _chip_defaults():
    """(TILE_M, vmem_limit_bytes) tuned per TPU generation."""
    try:
        cap = getattr(pltpu.get_tpu_info(), "vmem_capacity_bytes", None)
    except Exception:
        cap = None
    if cap is not None and cap >= 100 * 1024 * 1024:      # v5e / v6e (128 MiB VMEM)
        return 1024, 96 * 1024 * 1024
    return 512, 48 * 1024 * 1024                           # v7x (64 MiB/TC) / safe fallback


TILE_M, VMEM_LIMIT = _chip_defaults()


def _pad_last(a, n):
    pad = n - a.shape[-1]
    if pad == 0:
        return a
    return jnp.pad(a, [(0, 0)] * (a.ndim - 1) + [(0, pad)])


# ----------------------------- Pallas kernels -------------------------------

def _conv_bn_relu_kernel(p_ref, w_ref, t_ref, o_ref):
    """o = relu( patches @ (W * bn_scale) + bn_shift' )  (bias+BN folded host-side)."""
    h = jnp.dot(p_ref[...], w_ref[...], preferred_element_type=jnp.float32)
    o_ref[...] = jnp.maximum(h + t_ref[...], 0.0).astype(o_ref.dtype)


def _make_tail_kernel(Wq, L, downsample):
    """conv2(3x3, stride 1) as 9 matmuls on one flat (L, Cp) slab; tap offsets
    realized with XLU rolls of the f32 results + halo masks; fused BN2 shift,
    shortcut (1x1 conv+BN or identity), residual add and ReLU."""
    shifts = []
    for k in range(9):
        dh, dw = k // 3 - 1, k % 3 - 1
        shifts.append((-(dh * Wq + dw)) % L)      # static sublane roll per tap

    def kernel(h_ref, w2_ref, t2_ref, m_ref, *rest):
        if downsample:
            r_ref, wr_ref, tr_ref, o_ref = rest
            acc = jnp.dot(r_ref[0], wr_ref[...], preferred_element_type=jnp.float32)
            acc = acc + tr_ref[...] + t2_ref[...]
        else:
            r_ref, o_ref = rest
            acc = r_ref[0].astype(jnp.float32) + t2_ref[...]
        h = h_ref[0]                               # (L, Cp) bf16, never re-sliced
        for k in range(9):                         # MXU matmul -> XLU roll -> mask
            y = jnp.dot(h, w2_ref[k], preferred_element_type=jnp.float32)
            if shifts[k]:
                y = pltpu.roll(y, shift=shifts[k], axis=0)
            if k != 4:                             # centre tap needs no halo mask
                y = y * m_ref[k]
            acc = acc + y
        o_ref[0] = jnp.maximum(acc, 0.0).astype(o_ref.dtype)

    return kernel


# ------------------------------ pallas_call glue -----------------------------

def _conv_bn_relu(patches, w, shift, out_dtype):
    """Tiled (M, K) @ (K, Cp) + folded-BN shift + ReLU, pipelined over M tiles."""
    M0, K = patches.shape
    Cp = w.shape[1]
    tile_m = min(TILE_M, _round_up(M0, 8))
    M = _round_up(M0, tile_m)
    if M != M0:
        patches = jnp.pad(patches, ((0, M - M0), (0, 0)))
    flops = 2 * M * K * Cp
    bytes_accessed = (M * K * patches.dtype.itemsize + K * Cp * w.dtype.itemsize
                      + Cp * 4 + M * Cp * jnp.dtype(out_dtype).itemsize)
    out = pl.pallas_call(
        _conv_bn_relu_kernel,
        out_shape=jax.ShapeDtypeStruct((M, Cp), out_dtype),
        grid=(M // tile_m,),
        in_specs=[
            pl.BlockSpec((tile_m, K), lambda i: (i, 0)),
            pl.BlockSpec((K, Cp), lambda i: (0, 0)),       # grid-invariant weight
            pl.BlockSpec((1, Cp), lambda i: (0, 0)),       # grid-invariant shift
        ],
        out_specs=pl.BlockSpec((tile_m, Cp), lambda i: (i, 0)),
        compiler_params=pltpu.CompilerParams(
            dimension_semantics=("parallel",),
            vmem_limit_bytes=VMEM_LIMIT),
        cost_estimate=pl.CostEstimate(flops=int(flops), transcendentals=0,
                                      bytes_accessed=int(bytes_accessed)),
    )(patches, w, shift)
    return out[:M0]


def _tail(h1, w2, t2, msk, r, wr=None, tr=None, *, Wq, out_dtype=jnp.bfloat16):
    N, L, Cp = h1.shape
    Cin = r.shape[-1]
    downsample = wr is not None
    kernel = _make_tail_kernel(Wq, L, downsample)
    flops = N * (18 * L * Cp * Cp + (2 * L * Cin * Cp if downsample else 0))
    bytes_accessed = (h1.size * 2 + w2.size * 2 + msk.size * 4
                      + r.size * r.dtype.itemsize
                      + (wr.size * 2 if downsample else 0)
                      + N * L * Cp * jnp.dtype(out_dtype).itemsize)
    in_specs = [
        pl.BlockSpec((1, L, Cp), lambda n: (n, 0, 0)),
        pl.BlockSpec((9, Cp, Cp), lambda n: (0, 0, 0)),    # grid-invariant taps
        pl.BlockSpec((1, Cp), lambda n: (0, 0)),
        pl.BlockSpec((9, L, 1), lambda n: (0, 0, 0)),      # tiny halo masks
        pl.BlockSpec((1, L, Cin), lambda n: (n, 0, 0)),
    ]
    args = [h1, w2, t2, msk, r]
    if downsample:
        in_specs += [pl.BlockSpec((Cin, Cp), lambda n: (0, 0)),
                     pl.BlockSpec((1, Cp), lambda n: (0, 0))]
        args += [wr, tr]
    return pl.pallas_call(
        kernel,
        out_shape=jax.ShapeDtypeStruct((N, L, Cp), out_dtype),
        grid=(N,),
        in_specs=in_specs,
        out_specs=pl.BlockSpec((1, L, Cp), lambda n: (n, 0, 0)),
        compiler_params=pltpu.CompilerParams(
            dimension_semantics=("parallel",),
            vmem_limit_bytes=VMEM_LIMIT),
        cost_estimate=pl.CostEstimate(flops=int(flops), transcendentals=0,
                                      bytes_accessed=int(bytes_accessed)),
    )(*args)


# ------------------------------ JAX-side glue --------------------------------

def _im2col(x_nhwc, k, stride, pad, k_target):
    """(N,H,W,C) -> (N*Ho*Wo, k_target) patches, column order (kh, kw, c),
    zero-padded along K to k_target (fused into the same concatenate pass)."""
    N, H, W, C = x_nhwc.shape
    xp = jnp.pad(x_nhwc, ((0, 0), (pad, pad), (pad, pad), (0, 0)))
    Ho = (H + 2 * pad - k) // stride + 1
    Wo = (W + 2 * pad - k) // stride + 1
    cols = []
    for kh in range(k):
        for kw in range(k):
            cols.append(xp[:, kh:kh + (Ho - 1) * stride + 1:stride,
                              kw:kw + (Wo - 1) * stride + 1:stride, :])
    if k_target > k * k * C:
        cols.append(jnp.zeros((N, Ho, Wo, k_target - k * k * C), x_nhwc.dtype))
    patches = jnp.concatenate(cols, axis=-1)
    return patches.reshape(N * Ho * Wo, k_target), Ho, Wo


def _tap_masks(Ho, Wo, Wq):
    """(9, Ho*Wq, 1) f32 {0,1}: validity of the shifted input pixel per tap."""
    ii, jj = np.meshgrid(np.arange(Ho), np.arange(Wq), indexing="ij")
    masks = []
    for k in range(9):
        dh, dw = k // 3 - 1, k % 3 - 1
        ok = ((ii + dh >= 0) & (ii + dh < Ho) & (jj + dw >= 0) & (jj + dw < Wo))
        masks.append(ok.reshape(Ho * Wq, 1))
    return jnp.asarray(np.stack(masks, 0), dtype=jnp.float32)


def _fold_bn_bias(b, g, be, m, v):
    """Fold conv bias + eval-mode BN into one per-channel scale/shift pair."""
    scale = g / jnp.sqrt(v + EPS)
    shift = be + (b - m) * scale
    return scale.astype(jnp.float32), shift.astype(jnp.float32)


def _conv3x3_to_mat(w_oihw):
    """PyTorch OIHW 3x3 conv weight -> (9*Cin, Cout), matching im2col col order."""
    Cout, Cin, kh, kw = w_oihw.shape
    return jnp.transpose(w_oihw, (2, 3, 1, 0)).reshape(kh * kw * Cin, Cout)


def residual_block_forward(x_nchw, params, first_stride):
    x = jnp.transpose(x_nchw, (0, 2, 3, 1)).astype(jnp.float32)   # NHWC
    N, H, W, Cin = x.shape
    Cout = params["w1"].shape[0]
    Cp = _round_up(Cout, LANE)          # lane-dense padded output channels
    K0 = 9 * Cin
    Kp = _round_up(K0, LANE)            # lane/depth-aligned matmul K

    # ---- conv1 (3x3, stride, pad=1) + bn1 + relu as a tiled matmul -----------
    s1, t1 = _fold_bn_bias(params["b1"], params["g1"], params["be1"],
                           params["m1"], params["v1"])
    p1, Ho, Wo = _im2col(x, 3, first_stride, 1, Kp)               # (M, Kp)
    w1 = _conv3x3_to_mat(params["w1"]) * s1[None, :]              # BN scale folded
    w1 = jnp.pad(w1, ((0, Kp - K0), (0, Cp - Cout))).astype(jnp.bfloat16)
    t1p = _pad_last(t1[None, :], Cp)
    h1 = _conv_bn_relu(p1.astype(jnp.bfloat16), w1, t1p, jnp.bfloat16)  # (M, Cp)

    M0 = N * Ho * Wo
    h1 = h1[:M0].reshape(N, Ho, Wo, Cp)
    Wq = _round_up(Wo, 8)               # flat-row width used by the tail kernel
    if Wq != Wo:
        h1 = jnp.pad(h1, ((0, 0), (0, 0), (0, Wq - Wo), (0, 0)))
    L = Ho * Wq
    h1 = h1.reshape(N, L, Cp)           # free reshape when Wo % 8 == 0

    # ---- conv2 taps (BN scale folded), shift, halo masks ---------------------
    s2, t2 = _fold_bn_bias(params["b2"], params["g2"], params["be2"],
                           params["m2"], params["v2"])
    w2 = jnp.transpose(params["w2"], (2, 3, 1, 0)).reshape(9, Cout, Cout)
    w2 = w2 * s2[None, None, :]
    w2 = jnp.pad(w2, ((0, 0), (0, Cp - Cout), (0, Cp - Cout))).astype(jnp.bfloat16)
    t2p = _pad_last(t2[None, :], Cp)
    msk = _tap_masks(Ho, Wo, Wq)

    if first_stride > 1:
        # shortcut = conv1x1(stride) + BN: subsample spatially, matmul in-kernel
        sr, tr = _fold_bn_bias(params["br"], params["gr"], params["ber"],
                               params["mr"], params["vr"])
        r = x[:, ::first_stride, ::first_stride, :]               # (N, Ho, Wo, Cin)
        if Wq != Wo:
            r = jnp.pad(r, ((0, 0), (0, 0), (0, Wq - Wo), (0, 0)))
        r = r.reshape(N, L, Cin).astype(jnp.bfloat16)
        wr = jnp.transpose(params["wr"][:, :, 0, 0]) * sr[None, :]
        wr = jnp.pad(wr, ((0, 0), (0, Cp - Cout))).astype(jnp.bfloat16)
        trp = _pad_last(tr[None, :], Cp)
        out = _tail(h1, w2, t2p, msk, r, wr, trp, Wq=Wq)
    else:
        # nn.Identity shortcut: direct residual add (upcast to f32 in-kernel)
        assert Cin == Cout, "identity shortcut requires in_feats == out_feats"
        r = x
        if Wq != Wo:
            r = jnp.pad(r, ((0, 0), (0, 0), (0, Wq - Wo), (0, 0)))
        r = _pad_last(r, Cp).reshape(N, L, Cp).astype(jnp.bfloat16)
        out = _tail(h1, w2, t2p, msk, r, Wq=Wq)

    out = out.reshape(N, Ho, Wq, Cp)[:, :, :Wo, :Cout]            # drop padding
    # bf16 activations returned; a chained next block would consume them directly.
    return jnp.transpose(out, (0, 3, 1, 2))                       # NCHW


# ------------------------- reference (plain JAX/XLA) --------------------------

def reference_forward(x, params, first_stride):
    def conv(x, w, b, stride, pad):
        y = lax.conv_general_dilated(
            x, w, (stride, stride), [(pad, pad), (pad, pad)],
            dimension_numbers=("NCHW", "OIHW", "NCHW"))
        return y + b[None, :, None, None]

    def bn(x, g, be, m, v):
        return ((x - m[None, :, None, None]) /
                jnp.sqrt(v[None, :, None, None] + EPS)
                * g[None, :, None, None] + be[None, :, None, None])

    left = conv(x, params["w1"], params["b1"], first_stride, 1)
    left = jax.nn.relu(bn(left, params["g1"], params["be1"], params["m1"], params["v1"]))
    left = conv(left, params["w2"], params["b2"], 1, 1)
    left = bn(left, params["g2"], params["be2"], params["m2"], params["v2"])
    if first_stride > 1:
        right = conv(x, params["wr"], params["br"], first_stride, 0)
        right = bn(right, params["gr"], params["ber"], params["mr"], params["vr"])
    else:
        right = x
    return jax.nn.relu(left + right)


# ----------------------------- deterministic init ----------------------------

def init_params(key, in_feats, out_feats, first_stride):
    ks = jax.random.split(key, 18)
    p = {
        "w1": 0.1 * jax.random.normal(ks[0], (out_feats, in_feats, 3, 3), jnp.float32),
        "b1": 0.1 * jax.random.normal(ks[1], (out_feats,), jnp.float32),
        "g1": 1.0 + 0.1 * jax.random.normal(ks[2], (out_feats,), jnp.float32),
        "be1": 0.1 * jax.random.normal(ks[3], (out_feats,), jnp.float32),
        "m1": 0.1 * jax.random.normal(ks[4], (out_feats,), jnp.float32),
        "v1": 0.5 + jax.random.uniform(ks[5], (out_feats,), jnp.float32),
        "w2": 0.1 * jax.random.normal(ks[6], (out_feats, out_feats, 3, 3), jnp.float32),
        "b2": 0.1 * jax.random.normal(ks[7], (out_feats,), jnp.float32),
        "g2": 1.0 + 0.1 * jax.random.normal(ks[8], (out_feats,), jnp.float32),
        "be2": 0.1 * jax.random.normal(ks[9], (out_feats,), jnp.float32),
        "m2": 0.1 * jax.random.normal(ks[10], (out_feats,), jnp.float32),
        "v2": 0.5 + jax.random.uniform(ks[11], (out_feats,), jnp.float32),
    }
    if first_stride > 1:
        p.update({
            "wr": 0.1 * jax.random.normal(ks[12], (out_feats, in_feats, 1, 1), jnp.float32),
            "br": 0.1 * jax.random.normal(ks[13], (out_feats,), jnp.float32),
            "gr": 1.0 + 0.1 * jax.random.normal(ks[14], (out_feats,), jnp.float32),
            "ber": 0.1 * jax.random.normal(ks[15], (out_feats,), jnp.float32),
            "mr": 0.1 * jax.random.normal(ks[16], (out_feats,), jnp.float32),
            "vr": 0.5 + jax.random.uniform(ks[17], (out_feats,), jnp.float32),
        })
    return p


# ----------------------------------- main ------------------------------------

if __name__ == "__main__":
    key = jax.random.PRNGKey(0)
    kx1, kp1, kx2, kp2 = jax.random.split(key, 4)

    # bf16 matmul inputs / bf16 activations (f32 MXU accumulation) vs f32 XLA ref.
    RTOL, ATOL = 5e-2, 5e-2

    # Case 1: downsampling block (conv1x1 + BN shortcut), in=4 -> out=8, stride=2
    x1 = jax.random.normal(kx1, (2, 4, 16, 16), jnp.float32)
    params1 = init_params(kp1, 4, 8, 2)
    out1 = residual_block_forward(x1, params1, first_stride=2)
    jax.block_until_ready(out1)
    ref1 = reference_forward(x1, params1, 2)
    assert out1.shape == (2, 8, 8, 8)
    np.testing.assert_allclose(np.asarray(out1.astype(jnp.float32)),
                               np.asarray(ref1), rtol=RTOL, atol=ATOL)

    # Case 2: identity shortcut, in=out=4, stride=1
    x2 = jax.random.normal(kx2, (2, 4, 16, 16), jnp.float32)
    params2 = init_params(kp2, 4, 4, 1)
    out2 = residual_block_forward(x2, params2, first_stride=1)
    jax.block_until_ready(out2)
    ref2 = reference_forward(x2, params2, 1)
    assert out2.shape == (2, 4, 16, 16)
    np.testing.assert_allclose(np.asarray(out2.astype(jnp.float32)),
                               np.asarray(ref2), rtol=RTOL, atol=ATOL)

    print("KERNEL_OK")
</pallas_src>

<mosaic_0001>
module attributes {stable_mosaic.version = 11 : i64} {
  func.func @_conv_bn_relu_kernel(%arg0: i32, %arg1: memref<128x128xbf16, #tpu.memory_space<vmem>>, %arg2: memref<128x128xbf16, #tpu.memory_space<vmem>>, %arg3: memref<1x128xf32, #tpu.memory_space<vmem>>, %arg4: memref<128x128xbf16, #tpu.memory_space<vmem>>) attributes {dimension_semantics = [#tpu.dimension_semantics<parallel>], iteration_bounds = array<i64: 1>, scalar_prefetch = 0 : i64, scratch_operands = 0 : i64, tpu.core_type = #tpu.core_type<tc>, window_params = [{transform_indices = @transform_0, window_bounds = array<i64: 128, 128>}, {pipeline_mode = #tpu.pipeline_mode<synchronous>, transform_indices = @transform_1, window_bounds = array<i64: 128, 128>}, {pipeline_mode = #tpu.pipeline_mode<synchronous>, transform_indices = @transform_2, window_bounds = array<i64: 1, 128>}, {transform_indices = @transform_3, window_bounds = array<i64: 128, 128>}]} {
    %c0 = arith.constant 0 : index
    %c0_0 = arith.constant 0 : index
    %0 = vector.load %arg1[%c0, %c0_0] : memref<128x128xbf16, #tpu.memory_space<vmem>>, vector<128x128xbf16>
    %c0_1 = arith.constant 0 : index
    %c0_2 = arith.constant 0 : index
    %1 = vector.load %arg2[%c0_1, %c0_2] : memref<128x128xbf16, #tpu.memory_space<vmem>>, vector<128x128xbf16>
    %cst = arith.constant dense<0.000000e+00> : vector<128x128xf32>
    %2 = tpu.matmul %0, %1, %cst {dimension_numbers = #tpu.dot_dimension_numbers<[1], [0], [0], [1], [0, 0, 1, 1], [], []>} : vector<128x128xbf16>, vector<128x128xbf16>, vector<128x128xf32> -> vector<128x128xf32>
    %c0_3 = arith.constant 0 : index
    %c0_4 = arith.constant 0 : index
    %3 = vector.load %arg3[%c0_3, %c0_4] : memref<1x128xf32, #tpu.memory_space<vmem>>, vector<1x128xf32>
    %4 = vector.broadcast %3 : vector<1x128xf32> to vector<128x128xf32>
    %5 = arith.addf %2, %4 : vector<128x128xf32>
    %cst_5 = arith.constant 0.000000e+00 : f32
    %6 = vector.broadcast %cst_5 : f32 to vector<128x128xf32>
    %7 = arith.maximumf %5, %6 : vector<128x128xf32>
    %8 = arith.truncf %7 : vector<128x128xf32> to vector<128x128xbf16>
    %c0_6 = arith.constant 0 : index
    %c0_7 = arith.constant 0 : index
    %9 = vector.load %arg4[%c0_6, %c0_7] : memref<128x128xbf16, #tpu.memory_space<vmem>>, vector<128x128xbf16>
    tpu.vector_store %arg4[%c0_6, %c0_7], %8 {strides = array<i32>} : memref<128x128xbf16, #tpu.memory_space<vmem>>, vector<128x128xbf16>,
    return
  }
  func.func @transform_0(%arg0: i32) -> (i32, i32) {
    %c0_i32 = arith.constant 0 : i32
    %c0_i32_0 = arith.constant 0 : i32
    return %arg0, %c0_i32 : i32, i32
  }
  func.func @transform_1(%arg0: i32) -> (i32, i32) {
    %c0_i32 = arith.constant 0 : i32
    %c0_i32_0 = arith.constant 0 : i32
    %c0_i32_1 = arith.constant 0 : i32
    return %c0_i32, %c0_i32_0 : i32, i32
  }
  func.func @transform_2(%arg0: i32) -> (i32, i32) {
    %c0_i32 = arith.constant 0 : i32
    %c0_i32_0 = arith.constant 0 : i32
    %c0_i32_1 = arith.constant 0 : i32
    return %c0_i32, %c0_i32_0 : i32, i32
  }
  func.func @transform_3(%arg0: i32) -> (i32, i32) {
    %c0_i32 = arith.constant 0 : i32
    %c0_i32_0 = arith.constant 0 : i32
    return %arg0, %c0_i32 : i32, i32
  }
}

</mosaic_0001>

<bundles_post_ra>
// kernel: tpu_custom_call.1
= control target key start
LH: loop header
LB: loop body
LE: loop exit
PB: predicated region body
PF: predicated region fallthrough
CT: control target
= control target key end

     0   :  { %8 = vsyncpa [#allocation3], 0  ;;  %s683_s0 = inlined_call_operand.hbm [shape: bf16[128,128], index: 0, kind: input, shape index: {}]   ;;  %s684_s1 = inlined_call_operand.hbm [shape: bf16[128,128], index: 1, kind: input, shape index: {}]   ;;  %s685_s2 = inlined_call_operand.vmem [shape: f32[1,128], index: 2, kind: input, shape index: {}]   ;;  %s686_s3 = inlined_call_operand.hbm [shape: bf16[128,128], index: 3, kind: output, shape index: {}]  }
   0x1   :  { %9 = vsyncpa [#allocation6], 0 }
   0x2   :  { %10 = vsyncpa [#allocation4], 0  ;;  %s637_s12 = smov [#allocation2]  }
   0x3   :  { %s16_s13 = sshll.u32 %s637_s12, 4  ;;  %s17_s13 = int_to_ptr.vmem [resolvable:$true] %s16_s13 }
   0x4   :  { %s579_s14 = scalar_lea.vmem %s17_s13, 1024  ;;  %p584_p1 = scmp.lt.s32.totalorder %s17_s13, %s17_s13 }
   0x5   :  { %p580_p0 = scmp.ne.s32.totalorder %s17_s13, %s579_s14  ;;  %p585_p2 = scmp.lt.s32.totalorder %s579_s14, %s579_s14 }
   0x7   :  { %p586_p3 = por %p585_p2, %p584_p1 }
   0x9   :  { %p587_p4 = pnand %p586_p3, %p580_p0 }
   0xb   :  { %590 = shalt.err (!%p587_p4)
}
   0xc   :  { %s638_s15 = smov 64   ;;  %s639_s16 = smov 4  }
   0xd   :  { %22 = dma.hbm_to_vmem [thread:$0]  %s683_s0, 1024, %s17_s13, [#allocation3], %s638_s15, %s638_s15, %s639_s16  }
   0xe   :  { %s640_s19 = smov [#allocation5]  }
   0xf   :  { %s28_s20 = sshll.u32 %s640_s19, 4  ;;  %s29_s20 = int_to_ptr.vmem [resolvable:$true] %s28_s20 }
  0x10   :  { %s599_s21 = scalar_lea.vmem %s29_s20, 1024  ;;  %p604_p6 = scmp.lt.s32.totalorder %s29_s20, %s29_s20 }
  0x11   :  { %p600_p5 = scmp.ne.s32.totalorder %s29_s20, %s599_s21  ;;  %p605_p7 = scmp.lt.s32.totalorder %s599_s21, %s599_s21 }
  0x13   :  { %p606_p8 = por %p605_p7, %p604_p6 }
  0x15   :  { %p607_p9 = pnand %p606_p8, %p600_p5 }
  0x17   :  { %610 = shalt.err (!%p607_p9)
}
  0x18   :  { %34 = dma.hbm_to_vmem [thread:$0]  %s684_s1, 1024, %s29_s20, [#allocation6], %s638_s15, %s638_s15, %s639_s16  }
  0x19   :  { %631 = dma.done.wait [#allocation3], 1024  }
  0x1a   :  { %632 = vsyncadd [#allocation3], 4294966272 }
  0x1b   :  { %633 = dma.done.wait [#allocation6], 1024  }
  0x1c   :  { %634 = vsyncadd [#allocation6], 4294966272  ;;  %v555_v0 = vld [vmem:[#allocation5 + $0x38] sm:$0xff]   ;;  %v556_v1 = vld [vmem:[#allocation5 + $0x30] sm:$0xff]  }
  0x1d   :  { %502 = vmatprep.subr.bf16.mxu0 %v555_v0  ;;  %534 = vmatprep.subr.bf16.mxu1 %v555_v0  ;;  %v557_v2 = vld [vmem:[#allocation5 + $0x28] sm:$0xff]   ;;  %v558_v3 = vld [vmem:[#allocation5 + $0x20] sm:$0xff]   ;;  %v559_v6 = vld [vmem:[#allocation5 + $0x18] sm:$0xff]  }
  0x1e   :  { %503 = vmatpush3.bf16.msra.mxu0 %v555_v0  ;;  %542 = vmatpush3.bf16.msra.mxu1 %v555_v0  ;;  %v563_v4 = vld [vmem:[#allocation2] sm:$0xff]   ;;  %v560_v7 = vld [vmem:[#allocation5 + $0x10] sm:$0xff]   ;;  %v561_v8 = vld [vmem:[#allocation5 + $0x8] sm:$0xff]  }
  0x1f   :  { %504 = vmatprep.subr.bf16.mxu0 %v556_v1  ;;  %535 = vmatprep.subr.bf16.mxu1 %v556_v1  ;;  %v564_v5 = vld [vmem:[#allocation2 + $0x20] sm:$0xff]   ;;  %v565_v10 = vld [vmem:[#allocation2 + $0x8] sm:$0xff]   ;;  %v567_v12 = vld [vmem:[#allocation2 + $0x10] sm:$0xff]  }
  0x20   :  { %518 = vmatprep.mubr.bf16.mxu0 %v563_v4  ;;  %526 = vmatprep.mubr.bf16.mxu1 %v564_v5  ;;  %v562_v9 = vld [vmem:[#allocation5] sm:$0xff]   ;;  %v566_v11 = vld [vmem:[#allocation2 + $0x28] sm:$0xff]   ;;  %v568_v13 = vld [vmem:[#allocation2 + $0x30] sm:$0xff]  }
  0x21   :  { %v569_v14 = vld [vmem:[#allocation2 + $0x18] sm:$0xff]   ;;  %v390_v16 = vld [vmem:[%s685_s2] ss:$0 sm:$0xff]  ;;  %s641_s2 = smov [#allocation7]  }
  0x22   :  { %505 = vmatpush3.bf16.msra.mxu0 %v556_v1  ;;  %543 = vmatpush3.bf16.msra.mxu1 %v556_v1  ;;  %v570_v15 = vld [vmem:[#allocation2 + $0x38] sm:$0xff]   ;;  %s377_s24 = sshll.u32 %s641_s2, 4  ;;  %s378_s24 = int_to_ptr.vmem [resolvable:$true] %s377_s24 }
  0x23   :  { %506 = vmatprep.subr.bf16.mxu0 %v557_v2  ;;  %536 = vmatprep.subr.bf16.mxu1 %v557_v2  ;;  %s611_s25 = scalar_lea.vmem %s378_s24, 1024  ;;  %p616_p11 = scmp.lt.s32.totalorder %s378_s24, %s378_s24 }
  0x24   :  { %p612_p10 = scmp.ne.s32.totalorder %s378_s24, %s611_s25  ;;  %p617_p12 = scmp.lt.s32.totalorder %s611_s25, %s611_s25 }
  0x26   :  { %507 = vmatpush3.bf16.msra.mxu0 %v557_v2  ;;  %544 = vmatpush3.bf16.msra.mxu1 %v557_v2  ;;  %p618_p13 = por %p617_p12, %p616_p11 }
  0x27   :  { %508 = vmatprep.subr.bf16.mxu0 %v558_v3  ;;  %537 = vmatprep.subr.bf16.mxu1 %v558_v3 }
  0x28   :  { %p619_p0 = pnand %p618_p13, %p612_p10 }
  0x2a   :  { %509 = vmatpush3.bf16.msra.mxu0 %v558_v3  ;;  %545 = vmatpush3.bf16.msra.mxu1 %v558_v3 }
  0x2b   :  { %510 = vmatprep.subr.bf16.mxu0 %v559_v6  ;;  %538 = vmatprep.subr.bf16.mxu1 %v559_v6 }
  0x2e   :  { %511 = vmatpush3.bf16.msra.mxu0 %v559_v6  ;;  %546 = vmatpush3.bf16.msra.mxu1 %v559_v6 }
  0x2f   :  { %512 = vmatprep.subr.bf16.mxu0 %v560_v7  ;;  %539 = vmatprep.subr.bf16.mxu1 %v560_v7 }
  0x32   :  { %513 = vmatpush3.bf16.msra.mxu0 %v560_v7  ;;  %547 = vmatpush3.bf16.msra.mxu1 %v560_v7 }
  0x33   :  { %514 = vmatprep.subr.bf16.mxu0 %v561_v8  ;;  %540 = vmatprep.subr.bf16.mxu1 %v561_v8 }
  0x36   :  { %515 = vmatpush3.bf16.msra.mxu0 %v561_v8  ;;  %548 = vmatpush3.bf16.msra.mxu1 %v561_v8 }
  0x37   :  { %516 = vmatprep.subr.bf16.mxu0 %v562_v9  ;;  %541 = vmatprep.subr.bf16.mxu1 %v562_v9 }
  0x3a   :  { %517 = vmatpush3.bf16.msra.mxu0 %v562_v9  ;;  %549 = vmatpush3.bf16.msra.mxu1 %v562_v9 }
  0x3d   :  { %519 = vmatmul.mubr.bf16.vlgmr.msra.gmra.mxu0 %v565_v10  ;;  %527 = vmatmul.mubr.bf16.vlgmr.msra.gmra.mxu1 %v566_v11 }
  0x3e   :  { %522 = vmatprep.mubr.bf16.mxu0 %v567_v12  ;;  %530 = vmatprep.mubr.bf16.mxu1 %v568_v13 }
  0x45   :  { %523 = vmatmul.mubr.bf16.gmra.mxu0 %v569_v14  ;;  %531 = vmatmul.mubr.bf16.gmra.mxu1 %v570_v15 }
  0xfd   :  { %v520_v17 = vpop.f32.mrf.mxu0  ;;  %v528_v18 = vpop.f32.mrf.mxu1 }
  0xfe   :  { %v222_v19 = vadd.f32 %v520_v17, %v390_v16  ;;  %v254_v20 = vadd.f32 %v528_v18, %v390_v16 }
  0xff   :  { %v213_v21 = vpop.f32.mrf.mxu0  ;;  %v245_v22 = vpop.f32.mrf.mxu1 }
 0x100   :  { %v214_v23 = vadd.f32 %v390_v16, %v213_v21  ;;  %v246_v24 = vadd.f32 %v390_v16, %v245_v22  ;;  %v278_v29 = vmax.f32 %v222_v19, 0.0  ;;  %v286_v30 = vmax.f32 %v254_v20, 0.0 }
 0x101   :  { %v521_v25 = vpop.f32.mrf.mxu0  ;;  %v529_v26 = vpop.f32.mrf.mxu1 }
 0x102   :  { %v225_v27 = vadd.f32 %v521_v25, %v390_v16  ;;  %v257_v28 = vadd.f32 %v529_v26, %v390_v16  ;;  %v276_v37 = vmax.f32 %v214_v23, 0.0  ;;  %v284_v38 = vmax.f32 %v246_v24, 0.0 }
 0x103   :  { %v216_v31 = vpop.f32.mrf.mxu0  ;;  %v248_v32 = vpop.f32.mrf.mxu1 }
 0x104   :  { %v279_v33 = vmax.f32 %v225_v27, 0.0  ;;  %v287_v34 = vmax.f32 %v257_v28, 0.0  ;;  %v217_v35 = vadd.f32 %v390_v16, %v216_v31  ;;  %v249_v36 = vadd.f32 %v390_v16, %v248_v32 }
 0x105   :  { %v524_v39 = vpop.f32.mrf.mxu0  ;;  %v532_v40 = vpop.f32.mrf.mxu1 }
 0x106   :  { %v447_v41 = vpack.c.bf16 %v279_v33, %v278_v29  ;;  %v467_v42 = vpack.c.bf16 %v287_v34, %v286_v30  ;;  %v277_v43 = vmax.f32 %v217_v35, 0.0  ;;  %v285_v44 = vmax.f32 %v249_v36, 0.0 }
 0x107   :  { %v238_v45 = vadd.f32 %v524_v39, %v390_v16  ;;  %v270_v46 = vadd.f32 %v532_v40, %v390_v16  ;;  %v229_v47 = vpop.f32.mrf.mxu0  ;;  %v261_v48 = vpop.f32.mrf.mxu1 }
 0x108   :  { %479 = vst [vmem:[#allocation7 + $0x8] sm:$0xff] %v447_v41   ;;  %483 = vst [vmem:[#allocation7 + $0x28] sm:$0xff] %v467_v42   ;;  %v442_v49 = vpack.c.bf16 %v277_v43, %v276_v37  ;;  %v462_v50 = vpack.c.bf16 %v285_v44, %v284_v38  ;;  %v230_v51 = vadd.f32 %v390_v16, %v229_v47 }
 0x109   :  { %v262_v52 = vadd.f32 %v390_v16, %v261_v48  ;;  %v525_v53 = vpop.f32.mrf.mxu0  ;;  %v533_v54 = vpop.f32.mrf.mxu1  ;;  %v282_v57 = vmax.f32 %v238_v45, 0.0  ;;  %v290_v58 = vmax.f32 %v270_v46, 0.0 }
 0x10a   :  { %443 = vst [vmem:[#allocation7] sm:$0xff] %v442_v49   ;;  %482 = vst [vmem:[#allocation7 + $0x20] sm:$0xff] %v462_v50   ;;  %v241_v55 = vadd.f32 %v525_v53, %v390_v16  ;;  %v273_v56 = vadd.f32 %v533_v54, %v390_v16  ;;  %v280_v1 = vmax.f32 %v230_v51, 0.0 }
 0x10b   :  { %v232_v59 = vpop.f32.mrf.mxu0  ;;  %v264_v60 = vpop.f32.mrf.mxu1  ;;  %v288_v2 = vmax.f32 %v262_v52, 0.0 }
 0x10c   :  { %v283_v61 = vmax.f32 %v241_v55, 0.0  ;;  %v291_v62 = vmax.f32 %v273_v56, 0.0  ;;  %v233_v63 = vadd.f32 %v390_v16, %v232_v59  ;;  %v265_v0 = vadd.f32 %v390_v16, %v264_v60 }
 0x10e   :  { %v457_v3 = vpack.c.bf16 %v283_v61, %v282_v57  ;;  %v477_v4 = vpack.c.bf16 %v291_v62, %v290_v58  ;;  %v281_v5 = vmax.f32 %v233_v63, 0.0  ;;  %v289_v6 = vmax.f32 %v265_v0, 0.0 }
 0x110   :  { %481 = vst [vmem:[#allocation7 + $0x18] sm:$0xff] %v457_v3   ;;  %485 = vst [vmem:[#allocation7 + $0x38] sm:$0xff] %v477_v4   ;;  %v452_v7 = vpack.c.bf16 %v281_v5, %v280_v1  ;;  %v472_v8 = vpack.c.bf16 %v289_v6, %v288_v2 }
 0x112   :  { %480 = vst [vmem:[#allocation7 + $0x10] sm:$0xff] %v452_v7   ;;  %484 = vst [vmem:[#allocation7 + $0x30] sm:$0xff] %v472_v8  }
 0x113   :  { %622 = shalt.err (!%p619_p0)
}
 0x114   :  { %383 = dma.vmem_to_hbm [thread:$0]  %s378_s24, 1024, %s686_s3, [#allocation4], %s638_s15, %s638_s15, %s639_s16  }
 0x115   :  { %635 = dma.done.wait [#allocation4], 1024  }
 0x116   :  { %636 = vsyncadd [#allocation4], 4294966272 }
 0x117   :  { %387 = vsyncpa [#allocation3], 1 }
 0x118   :  { %388 = vsyncpa [#allocation6], 1 }
 0x119   :  { %389 = vsyncpa [#allocation4], 1 }

</bundles_post_ra>
